<compile_context>
chip_gen: v7x
topology: tpu7x:2x2x1
jax: 0.10.0
libtpu: 0.0.40
codegen_flags: <defaults>
</compile_context>

<pallas_src>
import jax
import jax.numpy as jnp
from jax import lax
from jax.experimental import pallas as pl
from jax.experimental.pallas import tpu as pltpu

EPS = 1e-6
NUM_GROUPS = 32


# ----------------------------------------------------------------------------
# Generation-aware defaults.
# ----------------------------------------------------------------------------
def _hw_defaults():
    """(vmem_limit_bytes, max_row_tile), conservative if the query fails."""
    vmem_phys = 0
    try:
        info = pltpu.get_tpu_info()
        vmem_phys = int(getattr(info, "vmem_capacity_bytes", 0))
    except Exception:
        pass
    if vmem_phys >= 100 * 1024 * 1024:        # v5e / v6e: 128 MiB VMEM
        return 96 * 1024 * 1024, 16
    return 48 * 1024 * 1024, 8                # v7x-class (64 MiB) / unknown


def _pick_row_tile(h, max_tile):
    """Largest divisor of h that is <= max_tile (never reverts to tile = h)."""
    t = max(1, min(max_tile, h))
    while h % t != 0:
        t -= 1
    return t


# ----------------------------------------------------------------------------
# Pass 1: row-tiled GroupNorm statistics ([sum, centered M2] per tile/channel).
# ----------------------------------------------------------------------------
def _make_stats_kernel(th, w, c):
    thw = th * w

    def kernel(x_ref, o_ref):
        x = x_ref[0].reshape(thw, c).astype(jnp.float32)
        s = jnp.sum(x, axis=0, keepdims=True)                  # (1, C)
        m = s * (1.0 / thw)
        d = x - m
        m2 = jnp.sum(d * d, axis=0, keepdims=True)             # (1, C)
        o_ref[0, 0] = jnp.concatenate([s, m2], axis=0)         # (2, C)

    return kernel


def gn_tile_stats(x, th, vmem_limit):
    n, h, w, c = x.shape
    t = h // th
    return pl.pallas_call(
        _make_stats_kernel(th, w, c),
        out_shape=jax.ShapeDtypeStruct((n, t, 2, c), jnp.float32),
        grid=(n, t),
        in_specs=[pl.BlockSpec((1, th, w, c), lambda i, r: (i, r, 0, 0))],
        out_specs=pl.BlockSpec((1, 1, 2, c), lambda i, r: (i, r, 0, 0)),
        compiler_params=pltpu.CompilerParams(
            dimension_semantics=("parallel", "parallel"),
            vmem_limit_bytes=vmem_limit),
    )(x)


def _gn_scale_shift(stats, gamma, beta, cnt_tile):
    """Exact pooled group mean/var from per-tile [sum, centered-M2] stats."""
    n, t, _, c = stats.shape
    g = NUM_GROUPS
    cpg = c // g
    s = stats[:, :, 0, :].reshape(n, t, g, cpg)
    m2 = stats[:, :, 1, :].reshape(n, t, g, cpg)
    total = t * cpg * cnt_tile
    mean_g = s.sum(axis=(1, 3)) / total                        # (N, G)
    m_tc = s / cnt_tile
    dev = m_tc - mean_g[:, None, :, None]
    var_g = (m2.sum(axis=(1, 3)) +
             cnt_tile * (dev * dev).sum(axis=(1, 3))) / total  # (N, G)
    inv_g = lax.rsqrt(var_g + EPS)
    mean_c = jnp.repeat(mean_g, cpg, axis=1)                   # (N, C)
    inv_c = jnp.repeat(inv_g, cpg, axis=1)
    scale = inv_c * gamma[None, :]
    shift = beta[None, :] - mean_c * scale
    return (scale.reshape(n, 1, c).astype(jnp.float32),
            shift.reshape(n, 1, c).astype(jnp.float32))


# ----------------------------------------------------------------------------
# Shared in-kernel helpers.
# ----------------------------------------------------------------------------
def _norm_silu_pad_tile(top, body, bot, scale, shift, mask_top, mask_bot,
                        th, w, c):
    """GN(scale/shift)+SiLU on a (TH+2)-row window, zero boundary halo rows,
    zero-pad width by 1 -> (TH+2, W+2, C) bf16 padded tile."""
    def ns(v):
        y = v.astype(jnp.float32) * scale + shift
        return y * jax.nn.sigmoid(y)

    rows = jnp.concatenate(
        [(ns(top) * mask_top).astype(jnp.bfloat16),
         ns(body).astype(jnp.bfloat16),
         (ns(bot) * mask_bot).astype(jnp.bfloat16)], axis=0)   # (TH+2, W, C)
    zcol = jnp.zeros((th + 2, 1, c), jnp.bfloat16)
    return jnp.concatenate([zcol, rows, zcol], axis=1)         # (TH+2, W+2, C)


def _im2col_dot(yp, w_mat, th, w, c):
    """One (TH*W, 9*C) @ (9*C, Co) MXU matmul, f32 accumulation."""
    patches = jnp.concatenate(
        [yp[dy:dy + th, dx:dx + w, :].reshape(th * w, c)
         for dy in range(3) for dx in range(3)], axis=1)
    return jnp.dot(patches, w_mat, preferred_element_type=jnp.float32)


# ----------------------------------------------------------------------------
# conv1: GN1+SiLU fused in, 3x3 conv, per-sample (temb+bias) epilogue,
#        GN2 tile statistics as a free f32 epilogue.  Output h1 in bf16.
# ----------------------------------------------------------------------------
def _make_conv1_kernel(th, w, ci, co):
    thw = th * w

    def kernel(xt_ref, xb_ref, xd_ref, sc_ref, sh_ref, w_ref, b_ref,
               o_ref, st_ref):
        r = pl.program_id(1)
        mask_top = (r > 0).astype(jnp.float32)
        mask_bot = (r < pl.num_programs(1) - 1).astype(jnp.float32)
        scale = sc_ref[...].reshape(1, 1, ci)
        shift = sh_ref[...].reshape(1, 1, ci)
        yp = _norm_silu_pad_tile(xt_ref[0], xb_ref[0], xd_ref[0],
                                 scale, shift, mask_top, mask_bot, th, w, ci)
        acc = _im2col_dot(yp, w_ref[...], th, w, ci)            # (THW, Co) f32
        hout = acc + b_ref[...].reshape(1, co)                  # conv bias + temb
        o_ref[0] = hout.astype(jnp.bfloat16).reshape(th, w, co)
        # GN2 tile statistics (f32, centered within the tile) -- free epilogue.
        s = jnp.sum(hout, axis=0, keepdims=True)
        m = s * (1.0 / thw)
        d = hout - m
        m2 = jnp.sum(d * d, axis=0, keepdims=True)
        st_ref[0, 0] = jnp.concatenate([s, m2], axis=0)

    return kernel


def conv1_fused(x, scale1, shift1, w1_mat, bias1, th, vmem_limit):
    n, h, w, ci = x.shape
    co = w1_mat.shape[-1]
    t = h // th
    return pl.pallas_call(
        _make_conv1_kernel(th, w, ci, co),
        out_shape=(jax.ShapeDtypeStruct((n, h, w, co), jnp.bfloat16),
                   jax.ShapeDtypeStruct((n, t, 2, co), jnp.float32)),
        grid=(n, t),
        in_specs=[
            pl.BlockSpec((1, 1, w, ci),
                         lambda i, r: (i, jnp.maximum(r * th - 1, 0), 0, 0)),
            pl.BlockSpec((1, th, w, ci), lambda i, r: (i, r, 0, 0)),
            pl.BlockSpec((1, 1, w, ci),
                         lambda i, r: (i, jnp.minimum(r * th + th, h - 1), 0, 0)),
            pl.BlockSpec((1, 1, ci), lambda i, r: (i, 0, 0)),
            pl.BlockSpec((1, 1, ci), lambda i, r: (i, 0, 0)),
            pl.BlockSpec((9 * ci, co), lambda i, r: (0, 0)),
            pl.BlockSpec((1, 1, co), lambda i, r: (i, 0, 0)),
        ],
        out_specs=(pl.BlockSpec((1, th, w, co), lambda i, r: (i, r, 0, 0)),
                   pl.BlockSpec((1, 1, 2, co), lambda i, r: (i, r, 0, 0))),
        compiler_params=pltpu.CompilerParams(
            dimension_semantics=("parallel", "parallel"),
            vmem_limit_bytes=vmem_limit),
    )(x, x, x, scale1, shift1, w1_mat, bias1)


# ----------------------------------------------------------------------------
# conv2: GN2+SiLU fused in, dropout=identity, 3x3 conv, residual fused
#        (1x1 nin matmul when Ci != Co, direct add when Ci == Co).
# ----------------------------------------------------------------------------
def _make_conv2_kernel(th, w, ci, co, use_nin):
    def kernel(*refs):
        if use_nin:
            (ht_ref, hb_ref, hd_ref, sc_ref, sh_ref, w_ref,
             x_ref, wn_ref, b_ref, o_ref) = refs
        else:
            (ht_ref, hb_ref, hd_ref, sc_ref, sh_ref, w_ref,
             x_ref, b_ref, o_ref) = refs
        r = pl.program_id(1)
        mask_top = (r > 0).astype(jnp.float32)
        mask_bot = (r < pl.num_programs(1) - 1).astype(jnp.float32)
        scale = sc_ref[...].reshape(1, 1, co)
        shift = sh_ref[...].reshape(1, 1, co)
        # dropout is identity here (inference / p = 0.0).
        yp = _norm_silu_pad_tile(ht_ref[0], hb_ref[0], hd_ref[0],
                                 scale, shift, mask_top, mask_bot, th, w, co)
        acc = _im2col_dot(yp, w_ref[...], th, w, co)            # (THW, Co) f32
        if use_nin:
            xs = x_ref[0].reshape(th * w, ci).astype(jnp.bfloat16)
            res = jnp.dot(xs, wn_ref[...], preferred_element_type=jnp.float32)
        else:
            res = x_ref[0].reshape(th * w, ci).astype(jnp.float32)
        o_ref[0] = (acc + res + b_ref[...].reshape(1, co)).reshape(th, w, co)

    return kernel


def conv2_fused(h1, scale2, shift2, w2_mat, x, wn, bias2, th, vmem_limit,
                use_nin):
    n, h, w, co = h1.shape
    ci = x.shape[-1]
    t = h // th
    in_specs = [
        pl.BlockSpec((1, 1, w, co),
                     lambda i, r: (i, jnp.maximum(r * th - 1, 0), 0, 0)),
        pl.BlockSpec((1, th, w, co), lambda i, r: (i, r, 0, 0)),
        pl.BlockSpec((1, 1, w, co),
                     lambda i, r: (i, jnp.minimum(r * th + th, h - 1), 0, 0)),
        pl.BlockSpec((1, 1, co), lambda i, r: (i, 0, 0)),
        pl.BlockSpec((1, 1, co), lambda i, r: (i, 0, 0)),
        pl.BlockSpec((9 * co, co), lambda i, r: (0, 0)),
        pl.BlockSpec((1, th, w, ci), lambda i, r: (i, r, 0, 0)),
    ]
    args = [h1, h1, h1, scale2, shift2, w2_mat, x]
    if use_nin:
        in_specs.append(pl.BlockSpec((ci, co), lambda i, r: (0, 0)))
        args.append(wn)
    in_specs.append(pl.BlockSpec((1, 1, co), lambda i, r: (0, 0, 0)))
    args.append(bias2)
    return pl.pallas_call(
        _make_conv2_kernel(th, w, ci, co, use_nin),
        out_shape=jax.ShapeDtypeStruct((n, h, w, co), jnp.float32),
        grid=(n, t),
        in_specs=in_specs,
        out_specs=pl.BlockSpec((1, th, w, co), lambda i, r: (i, r, 0, 0)),
        compiler_params=pltpu.CompilerParams(
            dimension_semantics=("parallel", "parallel"),
            vmem_limit_bytes=vmem_limit),
    )(*args)


# ----------------------------------------------------------------------------
# ResnetBlock forward (NHWC).
# ----------------------------------------------------------------------------
def resnet_block_forward(x_nhwc, temb, p, *, row_tile=None):
    n, h, w, ci = x_nhwc.shape
    co = p["w1"].shape[-1]
    vmem_limit, max_tile = _hw_defaults()
    if row_tile is not None:
        max_tile = row_tile
    th = _pick_row_tile(h, max_tile)
    cnt_tile = th * w
    use_nin = ci != co
    # TODO(synk): conv_shortcut=True (3x3 shortcut conv) is not implemented;
    # only the nin_shortcut / identity residual paths are supported.

    silu = lambda v: v * jax.nn.sigmoid(v)
    w1 = p["w1"].reshape(9 * ci, co).astype(jnp.bfloat16)
    w2 = p["w2"].reshape(9 * co, co).astype(jnp.bfloat16)
    # silu(temb) @ wt + bt + conv1 bias, precomputed once per sample in XLA.
    bias1 = (silu(temb.astype(jnp.float32)) @ p["wt"].astype(jnp.float32)
             + p["bt"] + p["bc1"]).reshape(n, 1, co).astype(jnp.float32)
    if use_nin:
        wn = p["wn"].astype(jnp.bfloat16)
        bias2 = (p["bc2"] + p["bn"]).reshape(1, 1, co).astype(jnp.float32)
    else:
        wn = None
        bias2 = p["bc2"].reshape(1, 1, co).astype(jnp.float32)

    # GroupNorm1: row-tiled Pallas stats -> tiny XLA pool -> scale/shift.
    st1 = gn_tile_stats(x_nhwc, th, vmem_limit)
    scale1, shift1 = _gn_scale_shift(st1, p["g1"], p["b1"], cnt_tile)

    # conv1 with GN1+SiLU fused in; emits GN2 tile stats as a free epilogue.
    h1, st2 = conv1_fused(x_nhwc, scale1, shift1, w1, bias1, th, vmem_limit)
    scale2, shift2 = _gn_scale_shift(st2, p["g2"], p["b2"], cnt_tile)

    # conv2 with GN2+SiLU fused in; dropout = identity; residual fused.
    # TODO(synk): training-mode dropout RNG is not implemented (p=0 / eval).
    return conv2_fused(h1, scale2, shift2, w2, x_nhwc, wn, bias2, th,
                       vmem_limit, use_nin)


# ----------------------------------------------------------------------------
# Pure-JAX reference (same bf16 conv operands / bf16 h1 storage, f32 GN stats).
# ----------------------------------------------------------------------------
def _ref_forward(x, temb, p):
    bf = jnp.bfloat16
    ci, co = x.shape[-1], p["w1"].shape[-1]

    def gn(v, gamma, beta):
        n_, h_, w_, c_ = v.shape
        g = NUM_GROUPS
        vg = v.reshape(n_, h_, w_, g, c_ // g)
        mean = vg.mean(axis=(1, 2, 4), keepdims=True)
        var = vg.var(axis=(1, 2, 4), keepdims=True)
        y = ((vg - mean) / jnp.sqrt(var + EPS)).reshape(n_, h_, w_, c_)
        return y * gamma + beta

    silu = lambda v: v * jax.nn.sigmoid(v)

    def conv(v, wt):
        return lax.conv_general_dilated(
            v.astype(bf), wt.astype(bf), window_strides=(1, 1), padding="SAME",
            dimension_numbers=("NHWC", "HWIO", "NHWC"),
            preferred_element_type=jnp.float32)

    h = silu(gn(x, p["g1"], p["b1"]))
    h = conv(h, p["w1"]) + p["bc1"]
    h = h + (silu(temb) @ p["wt"] + p["bt"])[:, None, None, :]
    h = h.astype(bf).astype(jnp.float32)      # kernel stores h1 in bf16
    h = silu(gn(h, p["g2"], p["b2"]))
    h = conv(h, p["w2"]) + p["bc2"]
    if ci != co:
        res = jnp.einsum("nhwc,cd->nhwd", x.astype(bf), p["wn"].astype(bf),
                         preferred_element_type=jnp.float32) + p["bn"]
    else:
        res = x
    return res + h


if __name__ == "__main__":
    def make_params(key, ci, co, t):
        ks = jax.random.split(key, 12)
        prm = {
            "g1": 1.0 + 0.1 * jax.random.normal(ks[0], (ci,), jnp.float32),
            "b1": 0.1 * jax.random.normal(ks[1], (ci,), jnp.float32),
            "w1": 0.1 * jax.random.normal(ks[2], (3, 3, ci, co), jnp.float32),
            "bc1": 0.1 * jax.random.normal(ks[3], (co,), jnp.float32),
            "wt": 0.1 * jax.random.normal(ks[4], (t, co), jnp.float32),
            "bt": 0.1 * jax.random.normal(ks[5], (co,), jnp.float32),
            "g2": 1.0 + 0.1 * jax.random.normal(ks[6], (co,), jnp.float32),
            "b2": 0.1 * jax.random.normal(ks[7], (co,), jnp.float32),
            "w2": 0.1 * jax.random.normal(ks[8], (3, 3, co, co), jnp.float32),
            "bc2": 0.1 * jax.random.normal(ks[9], (co,), jnp.float32),
        }
        if ci != co:
            prm["wn"] = 0.1 * jax.random.normal(ks[10], (ci, co), jnp.float32)
            prm["bn"] = 0.1 * jax.random.normal(ks[11], (co,), jnp.float32)
        return prm

    N, H, W, T = 2, 16, 16, 64
    key = jax.random.PRNGKey(0)
    k_par1, k_par2, kx, kt = jax.random.split(key, 4)

    # (C_IN != C_OUT -> nin_shortcut path) and (C_IN == C_OUT -> identity path)
    for ci, co, pkey in [(32, 64, k_par1), (64, 64, k_par2)]:
        params = make_params(pkey, ci, co, T)
        x_nchw = jax.random.normal(kx, (N, ci, H, W), jnp.float32)  # PyTorch input
        temb = jax.random.normal(kt, (N, T), jnp.float32)
        x_nhwc = jnp.transpose(x_nchw, (0, 2, 3, 1))                # NHWC inside

        out = jax.block_until_ready(resnet_block_forward(x_nhwc, temb, params))
        ref = jax.block_until_ready(_ref_forward(x_nhwc, temb, params))
        assert out.shape == (N, H, W, co), out.shape
        max_err = float(jnp.max(jnp.abs(out - ref)))
        assert jnp.allclose(out, ref, atol=2e-2, rtol=2e-2), (ci, co, max_err)

    print("KERNEL_OK")
</pallas_src>

<mosaic_0001>
module attributes {stable_mosaic.version = 11 : i64} {
  func.func @kernel(%arg0: i32, %arg1: i32, %arg2: memref<1x8x16x32xf32, #tpu.memory_space<vmem>>, %arg3: memref<1x1x2x32xf32, #tpu.memory_space<vmem>>) attributes {dimension_semantics = [#tpu.dimension_semantics<parallel>, #tpu.dimension_semantics<parallel>], iteration_bounds = array<i64: 2, 2>, scalar_prefetch = 0 : i64, scratch_operands = 0 : i64, tpu.core_type = #tpu.core_type<tc>, window_params = [{transform_indices = @transform_0, window_bounds = array<i64: 1, 8, 16, 32>}, {transform_indices = @transform_1, window_bounds = array<i64: 1, 1, 2, 32>}]} {
    %c0 = arith.constant 0 : index
    %c0_0 = arith.constant 0 : index
    %c0_1 = arith.constant 0 : index
    %c0_2 = arith.constant 0 : index
    %0 = vector.load %arg2[%c0, %c0_0, %c0_1, %c0_2] : memref<1x8x16x32xf32, #tpu.memory_space<vmem>>, vector<1x8x16x32xf32>
    %1 = vector.shape_cast %0 : vector<1x8x16x32xf32> to vector<8x16x32xf32>
    %2 = vector.shape_cast %1 : vector<8x16x32xf32> to vector<128x32xf32>
    %cst = arith.constant dense<0.000000e+00> : vector<32xf32>
    %3 = vector.multi_reduction <add>, %2, %cst [0] : vector<128x32xf32> to vector<32xf32>
    %4 = vector.shape_cast %3 : vector<32xf32> to vector<1x32xf32>
    %cst_3 = arith.constant 7.812500e-03 : f32
    %5 = vector.broadcast %cst_3 : f32 to vector<1x32xf32>
    %6 = arith.mulf %4, %5 : vector<1x32xf32>
    %7 = vector.broadcast %6 : vector<1x32xf32> to vector<128x32xf32>
    %8 = arith.subf %2, %7 : vector<128x32xf32>
    %9 = arith.mulf %8, %8 : vector<128x32xf32>
    %cst_4 = arith.constant dense<0.000000e+00> : vector<32xf32>
    %10 = vector.multi_reduction <add>, %9, %cst_4 [0] : vector<128x32xf32> to vector<32xf32>
    %11 = vector.shape_cast %10 : vector<32xf32> to vector<1x32xf32>
    %12 = tpu.concatenate %4, %11 in 0 : vector<1x32xf32>, vector<1x32xf32> -> vector<2x32xf32>
    %c0_5 = arith.constant 0 : index
    %c0_6 = arith.constant 0 : index
    %c0_7 = arith.constant 0 : index
    %c0_8 = arith.constant 0 : index
    %13 = vector.load %arg3[%c0_5, %c0_6, %c0_7, %c0_8] : memref<1x1x2x32xf32, #tpu.memory_space<vmem>>, vector<1x1x2x32xf32>
    %14 = vector.shape_cast %13 : vector<1x1x2x32xf32> to vector<2x32xf32>
    %15 = vector.shape_cast %12 : vector<2x32xf32> to vector<1x1x2x32xf32>
    tpu.vector_store %arg3[%c0_5, %c0_6, %c0_7, %c0_8], %15 {strides = array<i32>} : memref<1x1x2x32xf32, #tpu.memory_space<vmem>>, vector<1x1x2x32xf32>,
    return
  }
  func.func @transform_0(%arg0: i32, %arg1: i32) -> (i32, i32, i32, i32) {
    %c0_i32 = arith.constant 0 : i32
    %c0_i32_0 = arith.constant 0 : i32
    %c0_i32_1 = arith.constant 0 : i32
    return %arg0, %arg1, %c0_i32, %c0_i32_0 : i32, i32, i32, i32
  }
  func.func @transform_1(%arg0: i32, %arg1: i32) -> (i32, i32, i32, i32) {
    %c0_i32 = arith.constant 0 : i32
    %c0_i32_0 = arith.constant 0 : i32
    %c0_i32_1 = arith.constant 0 : i32
    return %arg0, %arg1, %c0_i32, %c0_i32_0 : i32, i32, i32, i32
  }
}

</mosaic_0001>

<bundles_post_ra>
// kernel: tpu_custom_call.1
= control target key start
LH: loop header
LB: loop body
LE: loop exit
PB: predicated region body
PF: predicated region fallthrough
CT: control target
= control target key end

     0   :  { %6 = vsyncpa [#allocation3], 0  ;;  %s875_s0 = inlined_call_operand.hbm [shape: f32[2,16,16,32], index: 0, kind: input, shape index: {}]   ;;  %s876_s1 = inlined_call_operand.hbm [shape: f32[2,2,2,32], index: 1, kind: output, shape index: {}]  }
   0x1   :  { %8 = vsyncpa [#allocation3 + $0x1], 0 }
   0x2   :  { %9 = vsyncpa [#allocation4], 0 }
   0x3   :  { %11 = vsyncpa [#allocation4 + $0x1], 0  ;;  %s627_s6 = smov 0   ;;  %s629_s7 = smov 0  }
   0x4   :  { %s631_s8 = smov 0   ;;  %s633_s9 = smov 0  }
   0x5   :  { %s635_s10 = smov 0   ;;  %s637_s11 = smov 0  }
   0x6   :  { %s639_s12 = smov 0   ;;  %s641_s13 = smov 0  }
   0x7 LB: > { %s385_s14 = sadd.s32 4294967295, %s611_s13   ;;  %s386_s15 = sadd.s32 4294967294, %s611_s13   ;;  %s611_s13 = sphi %s641_s13, %s17_s13   ;;  %s607_s12 = sphi %s639_s12, %s891_s12   ;;  %s603_s11 = sphi %s637_s11, %s890_s11   ;;  %s599_s10 = sphi %s635_s10, %s889_s10   ;;  %s595_s9 = sphi %s633_s9, %s888_s9   ;;  %s591_s8 = sphi %s631_s8, %s887_s8   ;;  %s587_s7 = sphi %s629_s7, %s886_s7   ;;  %s583_s6 = sphi %s627_s6, %s885_s6  }
   0x8   : > { %s26_s16 = sadd.s32 1, %s603_s11  ;;  %s29_s17 = sadd.s32 1, %s607_s12 }
   0x9   : > { %p27_p0 = scmp.ge.s32.totalorder %s26_s16, 2  ;;  %s38_s18 = sadd.s32 1, %s591_s8 }
   0xa   : > { %p45_p1 = scmp.ne.s32.totalorder %s591_s8, %s587_s7  ;;  %p46_p2 = scmp.eq.s32.totalorder %s611_s13, 0 }
   0xb   : > { %s893_s16 = smov (%p27_p0, %s26_s16), 0  ;;  %s895_s17 = smov (!%p27_p0, %s29_s17), %s607_s12 }
   0xc   : > { %s34_s19 = ssub.s32 %s603_s11, %s893_s16  ;;  %p680_p3 = por %p46_p2, %p45_p1 }
   0xd   : > { %p31_p4 = scmp.ge.s32.totalorder %s895_s17, 2  ;;  %p51_p5 = scmp.ne.s32.totalorder %s587_s7, %s583_s6 }
   0xe   : > { %p52_p6 = scmp.eq.s32.totalorder %s385_s14, 0  ;;  %p77_p7 = scmp.eq.s32.totalorder %s385_s14, 3 }
   0xf   : > { %s897_s17 = smov (%p31_p4, %s895_s17), 0  ;;  %p83_p10 = scmp.eq.s32.totalorder %s386_s15, 3 }
  0x10   : > { %p688_p8 = por %p52_p6, %p51_p5  ;;  %p692_p9 = por %p77_p7, %p45_p1 }
  0x11   : > { %s33_s23 = ssub.s32 %s607_s12, %s897_s17  ;;  %p698_p12 = por %p83_p10, %p51_p5 }
  0x12   : > { %s880_s22 = scalar_select %p692_p9, 1, 0 }
  0x13   : > { %s35_s24 = sor.u32 %s34_s19, %s33_s23  ;;  %p415_p13 = scmp.lt.s32.totalorder %s611_s13, 4 }
  0x14   : > { %p36_p11 = scmp.eq.s32.totalorder %s35_s24, 0  ;;  %s103_s26 = sand.u32 1, %s591_s8  }
  0x15   : > { %s881_s25 = scalar_select %p698_p12, 1, 0 }
  0x16   : > { %s705_s27 = scalar_select %p36_p11, %s591_s8, %s38_s18  }
  0x17   : > { %s389_s28 = sshll.u32 %s103_s26, 7  ;;  %s402_s29 = sshll.u32 %s603_s11, 4 }
  0x18   : > { %s392_s30 = sshll.u32 %s607_s12, 5  ;;  %s107_s2 = scalar_lea.vmem [#allocation2], %s389_s28 }
  0x19   : > { %s117_s3 = sshll.u32 %s107_s2, 4  ;;  %s114_s4 = sadd.s32 %s402_s29, %s392_s30  ;;  %s709_s3 = int_to_ptr.vmem [resolvable:$true] %s117_s3 }
  0x1a   : > { %s393_s5 = sshll.u32 %s114_s4, 7  ;;  %p713_p0 = pnand %p415_p13, %p680_p3 }
  0x1b   : > { %s720_s18 = scalar_lea.hbm %s875_s0, %s393_s5  ;;  %s722_s23 = scalar_lea.sflag [#allocation3], %s103_s26 }
  0x1c   : > { %s483_s24 = scalar_lea.hbm %s720_s18, 2048  ;;  %p485_p2 = pneg %p713_p0 }
  0x1d   : > { %p484_p1 = scmp.ne.s32.totalorder %s720_s18, %s483_s24  ;;  %s488_s29 = scalar_lea.hbm %s875_s0, 8192 }
  0x1e   : > { %p489_p5 = scmp.lt.u32.totalorder %s720_s18, %s875_s0  ;;  %p490_p6 = scmp.lt.u32.totalorder %s488_s29, %s483_s24 }
  0x1f   : > { %p486_p3 = pnand %p485_p2, %p484_p1  ;;  %p492_p10 = scmp.lt.u32.totalorder %s483_s24, %s720_s18 }
  0x20   : > { %p491_p7 = por %p490_p6, %p489_p5 }
  0x21   : > { %p487_p4 = pneg %p486_p3 }
  0x22   : > { %p493_p11 = por %p492_p10, %p491_p7 }
  0x24   : > { %p494_p13 = pnand %p493_p11, %p487_p4 }
  0x26   : > { %497 = shalt.err (!%p494_p13)
}
  0x27   : > { %s498_s26 = scalar_lea.vmem %s709_s3, 2048  ;;  %s613_s4 = smov [#allocation2]  }
  0x28   : > { %p499_p1 = scmp.ne.s32.totalorder %s709_s3, %s498_s26  ;;  %s503_s5 = sshll.u32 %s613_s4, 4  ;;  %s504_s5 = int_to_ptr.vmem [resolvable:$false] %s503_s5 }
  0x29   : > { %s505_s15 = scalar_lea.vmem %s504_s5, 4096  ;;  %p506_p9 = scmp.lt.s32.totalorder %s709_s3, %s504_s5 }
  0x2a   : > { %p501_p3 = pnand %p499_p1, %p485_p2  ;;  %p507_p5 = scmp.lt.s32.totalorder %s505_s15, %s498_s26 }
  0x2c   : > { %p502_p12 = pneg %p501_p3  ;;  %p508_p6 = por %p507_p5, %p506_p9 }
  0x2e   : > { %p509_p7 = pnand %p508_p6, %p502_p12 }
  0x30   : > { %512 = shalt.err (!%p509_p7)
}
  0x31   : > { %s614_s19 = smov 128   ;;  %s615_s24 = smov 8  }
  0x32   : > { %410 = dma.hbm_to_vmem [thread:$0]  (!%p713_p0), %s720_s18, 2048, %s709_s3, %s722_s23, %s614_s19, %s614_s19, %s615_s24  }
  0x33   : > { %p394_p2 = scmp.ge.s32.totalorder %s611_s13, 1  ;;  %p125_p4 = scmp.lt.s32.totalorder %s611_s13, 5 }
  0x35   : > { %p126_p10 = pnand %p394_p2, %p125_p4 }
  0x36   : > { %s753_s20 = sand.u32 (!%p126_p10), 1, %s587_s7  }
  0x37   : > { %129 = sbr.rel (%p126_p10) target bundleno = 171 (0xab), region = 24  ;;  %s395_s28 = sshll.u32 (!%p126_p10), %s753_s20, 7 }
  0x38   : > { %s132_s29 = scalar_lea.sflag (!%p126_p10), [#allocation3], %s753_s20  ;;  %s757_s30 = scalar_lea.vmem (!%p126_p10), [#allocation2], %s395_s28 }
  0x3e   : > { %574 = dma.done.wait (%p688_p8), %s132_s29, 2048  }
  0x3f   : > { %576 = vsyncadd (%p688_p8), %s132_s29, 4294965248  ;;  %vm171_vm0 = vcmask 261120   ;;  %v155_v0 = vld [vmem:[%s757_s30] sm:$0xff]  ;;  %v156_v1 = vld [vmem:[%s757_s30 + $0x8] sm:$0xff]  ;;  %s396_s21 = sshll.u32 %s753_s20, 1  ;;  %s398_s3 = sshll.u32 %s599_s10, 1 }
  0x40   : > { %v157_v2 = vld [vmem:[%s757_s30 + $0x10] sm:$0xff]  ;;  %v158_v3 = vld [vmem:[%s757_s30 + $0x18] sm:$0xff]  ;;  %v172_v4 = vsel %vm171_vm0, %v155_v0, 0.0  ;;  %v173_v5 = vsel %vm171_vm0, %v156_v1, 0.0  ;;  %v159_v7 = vld [vmem:[%s757_s30 + $0x20] sm:$0xff]  ;;  %s295_s14 = sadd.s32 %s595_s9, %s398_s3  ;;  %s153_s18 = scalar_lea.vmem [#allocation5], %s396_s21 }
  0x41   : > { %v175_v6 = vsel %vm171_vm0, %v157_v2, 0.0  ;;  %v174_v8 = vadd.f32 %v173_v5, %v172_v4  ;;  %v177_v9 = vsel %vm171_vm0, %v158_v3, 0.0  ;;  %v160_v10 = vld [vmem:[%s757_s30 + $0x28] sm:$0xff]  ;;  %v179_v12 = vsel %vm171_vm0, %v159_v7, 0.0  ;;  %v161_v13 = vld [vmem:[%s757_s30 + $0x30] sm:$0xff]  ;;  %v162_v16 = vld [vmem:[%s757_s30 + $0x38] sm:$0xff] }
  0x42   : > { %v181_v15 = vsel %vm171_vm0, %v160_v10, 0.0  ;;  %v183_v18 = vsel %vm171_vm0, %v161_v13, 0.0  ;;  %v163_v19 = vld [vmem:[%s757_s30 + $0x40] sm:$0xff]  ;;  %v185_v21 = vsel %vm171_vm0, %v162_v16, 0.0  ;;  %v164_v22 = vld [vmem:[%s757_s30 + $0x48] sm:$0xff]  ;;  %v165_v25 = vld [vmem:[%s757_s30 + $0x50] sm:$0xff] }
  0x43   : > { %v176_v11 = vadd.f32 %v175_v6, %v174_v8  ;;  %v187_v24 = vsel %vm171_vm0, %v163_v19, 0.0  ;;  %v189_v27 = vsel %vm171_vm0, %v164_v22, 0.0  ;;  %v166_v28 = vld [vmem:[%s757_s30 + $0x58] sm:$0xff]  ;;  %v191_v30 = vsel %vm171_vm0, %v165_v25, 0.0  ;;  %v167_v31 = vld [vmem:[%s757_s30 + $0x60] sm:$0xff]  ;;  %v168_v34 = vld [vmem:[%s757_s30 + $0x68] sm:$0xff] }
  0x44   : > { %v193_v33 = vsel %vm171_vm0, %v166_v28, 0.0  ;;  %v195_v36 = vsel %vm171_vm0, %v167_v31, 0.0  ;;  %v169_v37 = vld [vmem:[%s757_s30 + $0x70] sm:$0xff]  ;;  %v197_v39 = vsel %vm171_vm0, %v168_v34, 0.0  ;;  %v170_v40 = vld [vmem:[%s757_s30 + $0x78] sm:$0xff]  ;;  %s299_s23 = sshll.u32 %s153_s18, 4  ;;  %s817_s23 = int_to_ptr.vmem [resolvable:$true] %s299_s23 }
  0x45   : > { %v178_v14 = vadd.f32 %v177_v9, %v176_v11  ;;  %v199_v42 = vsel %vm171_vm0, %v169_v37, 0.0  ;;  %v201_v44 = vsel %vm171_vm0, %v170_v40, 0.0  ;;  %s399_s2 = sshll.u32 %s295_s14, 5  ;;  %vm279_vm1 = vcmask 1040384   ;;  %s284_s9 = scalar_lea.sflag [#allocation4], %s753_s20 }
  0x46   : > { %vm281_vm2 = vcmask 254976   ;;  %s822_s10 = scalar_lea.hbm %s876_s1, %s399_s2  ;;  %s513_s5 = scalar_lea.vmem %s817_s23, 32 }
  0x47   : > { %v180_v17 = vadd.f32 %v179_v12, %v178_v14  ;;  %p514_p8 = scmp.ne.s32.totalorder %s817_s23, %s513_s5  ;;  %p883_p9 = scmp.ne.s32.totalorder %s880_s22, 0 }
  0x48   : > { %s616_s15 = smov [#allocation5]  }
  0x49   : > { %v182_v20 = vadd.f32 %v181_v15, %v180_v17  ;;  %p515_p12 = pnand %p514_p8, %p883_p9  ;;  %s517_s19 = sshll.u32 %s616_s15, 4  ;;  %s518_s19 = int_to_ptr.vmem [resolvable:$false] %s517_s19 }
  0x4a   : > { %s519_s24 = scalar_lea.vmem %s518_s19, 64  ;;  %p520_p11 = scmp.lt.s32.totalorder %s817_s23, %s518_s19 }
  0x4b   : > { %v184_v23 = vadd.f32 %v183_v18, %v182_v20  ;;  %p516_p0 = pneg %p515_p12  ;;  %p521_p13 = scmp.lt.s32.totalorder %s519_s24, %s513_s5 }
  0x4d   : > { %v186_v26 = vadd.f32 %v185_v21, %v184_v23  ;;  %p522_p1 = por %p521_p13, %p520_p11 }
  0x4f   : > { %v188_v29 = vadd.f32 %v187_v24, %v186_v26  ;;  %p523_p3 = pnand %p522_p1, %p516_p0 }
  0x51   : > { %v190_v32 = vadd.f32 %v189_v27, %v188_v29 }
  0x53   : > { %v192_v35 = vadd.f32 %v191_v30, %v190_v32 }
  0x55   : > { %v194_v38 = vadd.f32 %v193_v33, %v192_v35 }
  0x57   : > { %v196_v41 = vadd.f32 %v195_v36, %v194_v38 }
  0x59   : > { %v198_v43 = vadd.f32 %v197_v39, %v196_v41 }
  0x5b   : > { %v200_v45 = vadd.f32 %v199_v42, %v198_v43 }
  0x5d   : > { %v202_v46 = vadd.f32 %v201_v44, %v200_v45 }
  0x5f   : > { %v203_v47 = vrot.slane %v202_v46, 4 }
  0x61   : > { %v204_v48 = vadd.f32 %v203_v47, %v202_v46 }
  0x63   : > { %v205_v49 = vrot.slane %v204_v48, 2 }
  0x65   : > { %v206_v50 = vadd.f32 %v205_v49, %v204_v48 }
  0x67   : > { %v207_v51 = vrot.slane %v206_v50, 1 }
  0x69   : > { %v795_v52 = vadd.f32 %v207_v51, %v206_v50 }
  0x6b   : > { %v209_v53 = vmul.f32 0.0078125, %v795_v52 }
  0x6d   : > { %v210_v54 = vsub.f32 %v155_v0, %v209_v53  ;;  %v211_v55 = vsub.f32 %v156_v1, %v209_v53  ;;  %v212_v56 = vsub.f32 %v157_v2, %v209_v53  ;;  %v213_v57 = vsub.f32 %v158_v3, %v209_v53 }
  0x6e   : > { %v214_v58 = vsub.f32 %v159_v7, %v209_v53  ;;  %v215_v62 = vsub.f32 %v160_v10, %v209_v53  ;;  %v216_v4 = vsub.f32 %v161_v13, %v209_v53  ;;  %v217_v12 = vsub.f32 %v162_v16, %v209_v53 }
  0x6f   : > { %v226_v59 = vmul.f32 %v210_v54, %v210_v54  ;;  %v227_v60 = vmul.f32 %v211_v55, %v211_v55  ;;  %v228_v61 = vmul.f32 %v212_v56, %v212_v56  ;;  %v229_v63 = vmul.f32 %v213_v57, %v213_v57 }
  0x70   : > { %v230_v5 = vmul.f32 %v214_v58, %v214_v58  ;;  %v231_v0 = vmul.f32 %v215_v62, %v215_v62  ;;  %v218_v3 = vsub.f32 %v163_v19, %v209_v53  ;;  %v232_v7 = vmul.f32 %v216_v4, %v216_v4 }
  0x71   : > { %v242_v6 = vsel %vm171_vm0, %v226_v59, 0.0  ;;  %v243_v8 = vsel %vm171_vm0, %v227_v60, 0.0  ;;  %v245_v9 = vsel %vm171_vm0, %v228_v61, 0.0  ;;  %v247_v1 = vsel %vm171_vm0, %v229_v63, 0.0 }
  0x72   : > { %v244_v11 = vadd.f32 %v243_v8, %v242_v6  ;;  %v249_v14 = vsel %vm171_vm0, %v230_v5, 0.0  ;;  %v219_v15 = vsub.f32 %v164_v22, %v209_v53  ;;  %v233_v13 = vmul.f32 %v217_v12, %v217_v12 }
  0x73   : > { %v251_v17 = vsel %vm171_vm0, %v231_v0, 0.0  ;;  %v220_v20 = vsub.f32 %v165_v25, %v209_v53  ;;  %v234_v21 = vmul.f32 %v218_v3, %v218_v3  ;;  %v253_v23 = vsel %vm171_vm0, %v232_v7, 0.0 }
  0x74   : > { %v246_v2 = vadd.f32 %v245_v9, %v244_v11  ;;  %v221_v16 = vsub.f32 %v166_v28, %v209_v53  ;;  %v235_v26 = vmul.f32 %v219_v15, %v219_v15  ;;  %v255_v27 = vsel %vm171_vm0, %v233_v13, 0.0 }
  0x75   : > { %v222_v19 = vsub.f32 %v167_v31, %v209_v53  ;;  %v236_v30 = vmul.f32 %v220_v20, %v220_v20  ;;  %v257_v32 = vsel %vm171_vm0, %v234_v21, 0.0  ;;  %v223_v22 = vsub.f32 %v168_v34, %v209_v53 }
  0x76   : > { %v248_v10 = vadd.f32 %v247_v1, %v246_v2  ;;  %v237_v35 = vmul.f32 %v221_v16, %v221_v16  ;;  %v259_v36 = vsel %vm171_vm0, %v235_v26, 0.0  ;;  %v224_v25 = vsub.f32 %v169_v37, %v209_v53 }
  0x77   : > { %v238_v39 = vmul.f32 %v222_v19, %v222_v19  ;;  %v261_v41 = vsel %vm171_vm0, %v236_v30, 0.0  ;;  %v225_v28 = vsub.f32 %v170_v40, %v209_v53  ;;  %v239_v43 = vmul.f32 %v223_v22, %v223_v22 }
  0x78   : > { %v250_v18 = vadd.f32 %v249_v14, %v248_v10  ;;  %v263_v44 = vsel %vm171_vm0, %v237_v35, 0.0  ;;  %v240_v45 = vmul.f32 %v224_v25, %v224_v25 }
  0x79   : > { %v265_v34 = vsel %vm171_vm0, %v238_v39, 0.0  ;;  %v241_v47 = vmul.f32 %v225_v28, %v225_v28  ;;  %v267_v48 = vsel %vm171_vm0, %v239_v43, 0.0 }
  0x7a   : > { %v252_v24 = vadd.f32 %v251_v17, %v250_v18  ;;  %v269_v49 = vsel %vm171_vm0, %v240_v45, 0.0 }
  0x7b   : > { %v271_v40 = vsel %vm171_vm0, %v241_v47, 0.0 }
  0x7c   : > { %v254_v29 = vadd.f32 %v253_v23, %v252_v24 }
  0x7e   : > { %v256_v33 = vadd.f32 %v255_v27, %v254_v29 }
  0x80   : > { %v258_v38 = vadd.f32 %v257_v32, %v256_v33 }
  0x82   : > { %v260_v42 = vadd.f32 %v259_v36, %v258_v38 }
  0x84   : > { %v262_v31 = vadd.f32 %v261_v41, %v260_v42 }
  0x86   : > { %v264_v46 = vadd.f32 %v263_v44, %v262_v31 }
  0x88   : > { %v266_v37 = vadd.f32 %v265_v34, %v264_v46 }
  0x8a   : > { %v268_v50 = vadd.f32 %v267_v48, %v266_v37 }
  0x8c   : > { %v270_v51 = vadd.f32 %v269_v49, %v268_v50 }
  0x8e   : > { %v272_v53 = vadd.f32 %v271_v40, %v270_v51 }
  0x90   : > { %v273_v54 = vrot.slane %v272_v53, 4 }
  0x92   : > { %v274_v55 = vadd.f32 %v273_v54, %v272_v53 }
  0x94   : > { %v275_v56 = vrot.slane %v274_v55, 2 }
  0x96   : > { %v276_v57 = vadd.f32 %v275_v56, %v274_v55 }
  0x98   : > { %v277_v58 = vrot.slane %v276_v57, 1 }
  0x9a   : > { %v278_v59 = vadd.f32 %v277_v58, %v276_v57 }
  0x9c   : > { %v280_v60 = vsel %vm279_vm1, %v795_v52, %v278_v59 }
  0x9d   : > { %282 = vst.msk [vmem:[%s153_s18] sm:$0x3] %vm281_vm2, %v280_v60 }
  0x9e   : > { %526 = shalt.err (!%p523_p3)
}
  0x9f   : > { %s527_s20 = scalar_lea.hbm %s822_s10, 32  ;;  %s531_s30 = scalar_lea.hbm %s876_s1, 128 }
  0xa0   : > { %p528_p5 = scmp.ne.s32.totalorder %s822_s10, %s527_s20  ;;  %p532_p2 = scmp.lt.u32.totalorder %s822_s10, %s876_s1 }
  0xa1   : > { %p533_p4 = scmp.lt.u32.totalorder %s531_s30, %s527_s20  ;;  %p535_p8 = scmp.lt.u32.totalorder %s527_s20, %s822_s10 }
  0xa2   : > { %p529_p6 = pnand %p528_p5, %p883_p9 }
  0xa3   : > { %p534_p10 = por %p533_p4, %p532_p2 }
  0xa4   : > { %p530_p7 = pneg %p529_p6 }
  0xa5   : > { %p536_p12 = por %p535_p8, %p534_p10 }
  0xa7   : > { %p537_p0 = pnand %p536_p12, %p530_p7 }
  0xa9   : > { %540 = shalt.err (!%p537_p0)
}
  0xaa   : > { %405 = dma.vmem_to_hbm [thread:$0]  (%p883_p9), %s817_s23, 32, %s822_s10, %s284_s9  }
  0xab PF: > { %p416_p11 = scmp.ge.s32.totalorder %s611_s13, 2  ;;  %s311_s14 = sand.u32 1, %s583_s6  }
  0xac   : > { %p884_p13 = scmp.ne.s32.totalorder %s881_s25, 0  ;;  %s312_s18 = scalar_lea.sflag [#allocation4], %s311_s14 }
  0xae   : > { %p412_p1 = pnand %p416_p11, %p884_p13 }
  0xb0   : > { %578 = dma.done.wait (!%p412_p1), %s312_s18, 32  }
  0xb1   : > { %580 = vsyncadd (!%p412_p1), %s312_s18, 4294967264  ;;  %s17_s13 = sadd.s32 1, %s611_s13   ;;  %s885_s6 = smov %s587_s7 }
  0xb2   : > { %p14_p3 = scmp.ge.s32.totalorder %s17_s13, 6   ;;  %s886_s7 = smov %s591_s8 }
  0xb3   : > { %s887_s8 = smov %s705_s27  ;;  %s888_s9 = smov %s603_s11 }
  0xb4   : > { %s889_s10 = smov %s607_s12  ;;  %s890_s11 = smov %s893_s16 }
  0xb5   : > { %s891_s12 = smov %s897_s17  ;;  %16 = sbr.rel (!%p14_p3) target bundleno = 7 (0x7), region = 69 }
  0xbc   :  { %317 = vsyncpa [#allocation3], 1 }
  0xbd   :  { %319 = vsyncpa [#allocation3 + $0x1], 1 }
  0xbe   :  { %320 = vsyncpa [#allocation4], 1 }
  0xbf   :  { %322 = vsyncpa [#allocation4 + $0x1], 1 }

</bundles_post_ra>
